<compile_context>
chip_gen: v6e
topology: v6e:2x2x1
jax: 0.10.0
libtpu: 0.0.40
codegen_flags: <defaults>
</compile_context>

<pallas_src>
import functools

import jax
import jax.numpy as jnp
from jax.experimental import pallas as pl
from jax.experimental.pallas import tpu as pltpu


def _proto_kernel(q_ref, s_ref, o_ref, *, way, shot, mode, use_direct):
    """Kernel over a block of Tb episodes.

    q_ref : (Tb, way*query, c)   query features
    s_ref : (Tb, way*shot,  c)   support features
    o_ref : (Tb, way, way*query) similarity / negative squared distance,
                                 stored transposed (lane-dense on wq).
    """
    q = q_ref[...]                                  # native dtype -> MXU directly
    s = s_ref[...]
    tb, wq, c = q.shape

    # Prototypes: mean over the static shot axis.  Pure VPU/XLU work; no MXU.
    s32 = s.astype(jnp.float32)
    proto32 = s32.reshape(tb, way, shot, c).sum(axis=2) * (1.0 / shot)  # (Tb,way,c)

    q32 = q.astype(jnp.float32)
    prec = (jax.lax.Precision.HIGH if q.dtype == jnp.float32
            else jax.lax.Precision.DEFAULT)

    if mode == "euclidean":
        if use_direct:
            # Small way*c: broadcast-subtract-square on the VPU beats a
            # latency-bound tiny matmul and is numerically exact (no
            # cancellation from the matmul identity).
            diff = proto32[:, :, None, :] - q32[:, None, :, :]   # (Tb,way,wq,c)
            out = -jnp.sum(diff * diff, axis=-1)                 # (Tb,way,wq)
        else:
            # -||q-p||^2 = 2 q.p - ||q||^2 - ||p||^2 ; heavy term on the MXU
            # with way streamed as rows (M) and wq on the output lanes (N).
            protoc = proto32.astype(q.dtype)
            qp = jnp.einsum("bwc,bqc->bwq", protoc, q,
                            preferred_element_type=jnp.float32, precision=prec)
            qsq = jnp.sum(q32 * q32, axis=-1)                    # (Tb, wq)
            psq = jnp.sum(proto32 * proto32, axis=-1)            # (Tb, way)
            out = 2.0 * qp - psq[:, :, None] - qsq[:, None, :]
    else:  # cos_sim (validated in the wrapper)
        eps = 1e-12  # matches torch.nn.functional.normalize default eps
        # rsqrt(max(|x|^2, eps^2)) == 1 / max(|x|, eps)   (EUP slot, not VALU div)
        q_inv = jax.lax.rsqrt(
            jnp.maximum(jnp.sum(q32 * q32, axis=-1, keepdims=True), eps * eps))
        p_inv = jax.lax.rsqrt(
            jnp.maximum(jnp.sum(proto32 * proto32, axis=-1, keepdims=True),
                        eps * eps))
        qn = (q32 * q_inv).astype(q.dtype)
        pn = (proto32 * p_inv).astype(q.dtype)
        out = jnp.einsum("bwc,bqc->bwq", pn, qn,
                         preferred_element_type=jnp.float32, precision=prec)

    o_ref[...] = out.astype(o_ref.dtype)            # (Tb, way, wq)


def _tpu_vmem_capacity_bytes():
    """Physical VMEM if queryable; conservative (v7x-sized) fallback."""
    try:
        info = pltpu.get_tpu_info()
        v = getattr(info, "vmem_capacity_bytes", None)
        if isinstance(v, int) and v > 0:
            return v
    except Exception:
        pass
    return 64 * 1024 * 1024


def _num_tensorcores():
    """TensorCores per chip (v7x: 2, v5e/v6e: 1).  Probe defensively."""
    try:
        info = pltpu.get_tpu_info()
        for name in ("num_cores", "core_count", "num_tensorcores",
                     "tensorcore_count"):
            v = getattr(info, name, None)
            if isinstance(v, int) and v > 0:
                return v
    except Exception:
        pass
    return 1


def _pick_episode_tile(t, per_ep_bytes, budget_bytes, ncores):
    """Episodes per grid step.

    Big enough to amortize the ~0.35us/step pipeline overhead, small enough to
    stay inside the per-generation VMEM budget.  The >=ncores-step clamp only
    applies when more than one TensorCore exists (v7x megacore); on v5e/v6e it
    would just shrink blocks for nothing.  Prefer a tile that divides t so no
    block is ragged (and no wrapper-side jnp.pad is ever needed).
    """
    tb_max = max(1, min(t, budget_bytes // max(per_ep_bytes, 1)))
    if ncores >= 2 and t >= 2:
        tb_max = min(tb_max, pl.cdiv(t, ncores))
    best_div = 1
    for tb in range(tb_max, 0, -1):
        if t % tb == 0:
            best_div = tb
            break
    if 2 * best_div >= tb_max:      # divisor is close to the budget-optimal size
        return best_div
    return tb_max                   # ragged last block; Pallas masks the tail


def proto_layer(query_feat, support_feat, way_num, shot_num, query_num,
                mode="euclidean"):
    """JAX/Pallas equivalent of ProtoLayer.forward."""
    if mode not in ("euclidean", "cos_sim"):
        raise ValueError(f"unknown mode: {mode}")

    t, wq_in, c = query_feat.shape
    ts, ws_in, cs = support_feat.shape
    wq = way_num * query_num
    ws = way_num * shot_num
    assert wq_in == wq and ws_in == ws and ts == t and cs == c

    query_feat = query_feat.reshape(t, wq, c)
    support_feat = support_feat.reshape(t, ws, c)
    itemsize = jnp.dtype(query_feat.dtype).itemsize

    # Small way*c -> pure-VPU euclidean path (no MXU, no identity cancellation).
    use_direct = (mode == "euclidean") and (way_num * c <= 1024)

    # Per-episode VMEM footprint: streamed blocks + f32 working copies
    # (+ the broadcast diff when the direct path is taken).
    per_ep = ((wq + ws) * c * itemsize + way_num * wq * itemsize
              + (wq + way_num) * c * 4
              + (wq * way_num * c * 4 if use_direct else 0))

    # Generation-aware budget: big blocks on 128 MiB-VMEM chips (v5e/v6e),
    # v7x-safe 2 MiB otherwise.  Raise the scoped-VMEM limit only when needed.
    big_vmem = _tpu_vmem_capacity_bytes() >= 96 * 1024 * 1024
    budget = (6 if big_vmem else 2) * 1024 * 1024
    vmem_limit = 64 * 1024 * 1024 if big_vmem else None

    tb = _pick_episode_tile(t, per_ep, budget, _num_tensorcores())
    grid = (pl.cdiv(t, tb),)

    kernel = functools.partial(_proto_kernel, way=way_num, shot=shot_num,
                               mode=mode, use_direct=use_direct)

    # NOTE: c is consumed whole as the minor dim, so each block is one
    # contiguous DMA; we intentionally do NOT zero-pad c to 128 (that would
    # inflate HBM traffic) — pad upstream in the feature extractor if desired.
    # The kernel emits (t, way, wq) so the in-kernel store is lane-dense on wq;
    # the tiny transpose back to (t, wq, way) happens in the wrapper.
    out_t = pl.pallas_call(
        kernel,
        out_shape=jax.ShapeDtypeStruct((t, way_num, wq), query_feat.dtype),
        grid=grid,
        in_specs=[
            pl.BlockSpec((tb, wq, c), lambda i: (i, 0, 0)),
            pl.BlockSpec((tb, ws, c), lambda i: (i, 0, 0)),
        ],
        out_specs=pl.BlockSpec((tb, way_num, wq), lambda i: (i, 0, 0)),
        compiler_params=pltpu.CompilerParams(
            dimension_semantics=("parallel",),
            vmem_limit_bytes=vmem_limit),
    )(query_feat, support_feat)

    return jnp.swapaxes(out_t, 1, 2)        # (t, way*query, way)


def _reference(query_feat, support_feat, way_num, shot_num, query_num, mode):
    """Pure-JAX reference mirroring the PyTorch module exactly (f32 math)."""
    t, _, c = query_feat.shape
    q = query_feat.reshape(t, way_num * query_num, c).astype(jnp.float32)
    s = support_feat.reshape(t, way_num, shot_num, c).astype(jnp.float32)
    proto = jnp.mean(s, axis=2)                                  # (t, way, c)
    if mode == "euclidean":
        diff = q[:, :, None, :] - proto[:, None, :, :]
        return -jnp.sum(diff * diff, axis=3)
    eps = 1e-12
    qn = q / jnp.maximum(jnp.linalg.norm(q, axis=-1, keepdims=True), eps)
    pn = proto / jnp.maximum(jnp.linalg.norm(proto, axis=-1, keepdims=True), eps)
    return jnp.sum(qn[:, :, None, :] * pn[:, None, :, :], axis=-1)


if __name__ == "__main__":
    # Small few-shot setup: 5 episodes, 4-way 2-shot, 3 queries per way, c=64.
    t, way_num, shot_num, query_num, c = 5, 4, 2, 3, 64
    wq = way_num * query_num
    ws = way_num * shot_num

    key = jax.random.PRNGKey(0)
    kq, ks = jax.random.split(key)
    query_feat = jax.random.normal(kq, (t, wq, c), dtype=jnp.float32)
    support_feat = jax.random.normal(ks, (t, ws, c), dtype=jnp.float32)

    # euclidean mode (default)
    out_euc = jax.block_until_ready(
        proto_layer(query_feat, support_feat, way_num, shot_num, query_num,
                    mode="euclidean"))
    ref_euc = _reference(query_feat, support_feat, way_num, shot_num,
                         query_num, "euclidean")
    assert out_euc.shape == (t, wq, way_num)
    assert jnp.allclose(out_euc, ref_euc, atol=5e-3, rtol=1e-3), (
        float(jnp.max(jnp.abs(out_euc - ref_euc))))

    # cos_sim mode
    out_cos = jax.block_until_ready(
        proto_layer(query_feat, support_feat, way_num, shot_num, query_num,
                    mode="cos_sim"))
    ref_cos = _reference(query_feat, support_feat, way_num, shot_num,
                         query_num, "cos_sim")
    assert out_cos.shape == (t, wq, way_num)
    assert jnp.allclose(out_cos, ref_cos, atol=5e-3, rtol=1e-3), (
        float(jnp.max(jnp.abs(out_cos - ref_cos))))

    print("KERNEL_OK")
</pallas_src>

<mosaic_0001>
module attributes {stable_mosaic.version = 11 : i64} {
  func.func @_proto_kernel(%arg0: i32, %arg1: memref<5x12x64xf32, #tpu.memory_space<vmem>>, %arg2: memref<5x8x64xf32, #tpu.memory_space<vmem>>, %arg3: memref<5x4x12xf32, #tpu.memory_space<vmem>>) attributes {dimension_semantics = [#tpu.dimension_semantics<parallel>], iteration_bounds = array<i64: 1>, scalar_prefetch = 0 : i64, scratch_operands = 0 : i64, tpu.core_type = #tpu.core_type<tc>, window_params = [{transform_indices = @transform_0, window_bounds = array<i64: 5, 12, 64>}, {transform_indices = @transform_1, window_bounds = array<i64: 5, 8, 64>}, {transform_indices = @transform_2, window_bounds = array<i64: 5, 4, 12>}]} {
    %c0 = arith.constant 0 : index
    %c0_0 = arith.constant 0 : index
    %c0_1 = arith.constant 0 : index
    %0 = vector.load %arg1[%c0, %c0_0, %c0_1] : memref<5x12x64xf32, #tpu.memory_space<vmem>>, vector<5x12x64xf32>
    %c0_2 = arith.constant 0 : index
    %c0_3 = arith.constant 0 : index
    %c0_4 = arith.constant 0 : index
    %1 = vector.load %arg2[%c0_2, %c0_3, %c0_4] : memref<5x8x64xf32, #tpu.memory_space<vmem>>, vector<5x8x64xf32>
    %2 = vector.shape_cast %1 : vector<5x8x64xf32> to vector<5x4x2x64xf32>
    %cst = arith.constant dense<0.000000e+00> : vector<5x4x64xf32>
    %3 = vector.multi_reduction <add>, %2, %cst [2] : vector<5x4x2x64xf32> to vector<5x4x64xf32>
    %cst_5 = arith.constant 5.000000e-01 : f32
    %4 = vector.broadcast %cst_5 : f32 to vector<5x4x64xf32>
    %5 = arith.mulf %3, %4 : vector<5x4x64xf32>
    %6 = vector.shape_cast %5 : vector<5x4x64xf32> to vector<5x4x1x64xf32>
    %7 = vector.shape_cast %0 : vector<5x12x64xf32> to vector<5x1x12x64xf32>
    %8 = vector.broadcast %6 : vector<5x4x1x64xf32> to vector<5x4x12x64xf32>
    %9 = vector.broadcast %7 : vector<5x1x12x64xf32> to vector<5x4x12x64xf32>
    %10 = arith.subf %8, %9 : vector<5x4x12x64xf32>
    %11 = arith.mulf %10, %10 : vector<5x4x12x64xf32>
    %cst_6 = arith.constant dense<0.000000e+00> : vector<5x4x12xf32>
    %12 = vector.multi_reduction <add>, %11, %cst_6 [3] : vector<5x4x12x64xf32> to vector<5x4x12xf32>
    %cst_7 = arith.constant 0.000000e+00 : f32
    %13 = vector.broadcast %cst_7 : f32 to vector<5x4x12xf32>
    %14 = arith.subf %13, %12 : vector<5x4x12xf32>
    %c0_8 = arith.constant 0 : index
    %c0_9 = arith.constant 0 : index
    %c0_10 = arith.constant 0 : index
    %15 = vector.load %arg3[%c0_8, %c0_9, %c0_10] : memref<5x4x12xf32, #tpu.memory_space<vmem>>, vector<5x4x12xf32>
    tpu.vector_store %arg3[%c0_8, %c0_9, %c0_10], %14 {strides = array<i32>} : memref<5x4x12xf32, #tpu.memory_space<vmem>>, vector<5x4x12xf32>,
    return
  }
  func.func @transform_0(%arg0: i32) -> (i32, i32, i32) {
    %c0_i32 = arith.constant 0 : i32
    %c0_i32_0 = arith.constant 0 : i32
    %c0_i32_1 = arith.constant 0 : i32
    return %arg0, %c0_i32, %c0_i32_0 : i32, i32, i32
  }
  func.func @transform_1(%arg0: i32) -> (i32, i32, i32) {
    %c0_i32 = arith.constant 0 : i32
    %c0_i32_0 = arith.constant 0 : i32
    %c0_i32_1 = arith.constant 0 : i32
    return %arg0, %c0_i32, %c0_i32_0 : i32, i32, i32
  }
  func.func @transform_2(%arg0: i32) -> (i32, i32, i32) {
    %c0_i32 = arith.constant 0 : i32
    %c0_i32_0 = arith.constant 0 : i32
    %c0_i32_1 = arith.constant 0 : i32
    return %arg0, %c0_i32, %c0_i32_0 : i32, i32, i32
  }
}

</mosaic_0001>

<bundles_post_ra>
// kernel: tpu_custom_call.1
= control target key start
LH: loop header
LB: loop body
LE: loop exit
PB: predicated region body
PF: predicated region fallthrough
CT: control target
= control target key end

     0   :  { %7 = vsyncpa [#allocation3], 0  ;;  %s1226_s0 = inlined_call_operand.hbm [shape: f32[5,12,64], index: 0, kind: input, shape index: {}]   ;;  %s1227_s1 = inlined_call_operand.hbm [shape: f32[5,8,64], index: 1, kind: input, shape index: {}]   ;;  %s1228_s2 = inlined_call_operand.hbm [shape: f32[5,4,12], index: 2, kind: output, shape index: {}]  }
   0x1   :  { %8 = vsyncpa [#allocation6], 0 }
   0x2   :  { %9 = vsyncpa [#allocation4], 0  ;;  %s918_s9 = smov [#allocation2]  }
   0x3   :  { %s15_s10 = sshll.u32 %s918_s9, 4  ;;  %s16_s10 = int_to_ptr.vmem [resolvable:$true] %s15_s10 }
   0x4   :  { %s860_s11 = scalar_lea.vmem %s16_s10, 1280  ;;  %p865_p1 = scmp.lt.s32.totalorder %s16_s10, %s16_s10 }
   0x5   :  { %p861_p0 = scmp.ne.s32.totalorder %s16_s10, %s860_s11  ;;  %p866_p2 = scmp.lt.s32.totalorder %s860_s11, %s860_s11 }
   0x7   :  { %p867_p3 = por %p866_p2, %p865_p1 }
   0x9   :  { %p868_p4 = pnand %p867_p3, %p861_p0 }
   0xb   :  { %871 = shalt.err (!%p868_p4)
}
   0xc   :  { %s919_s12 = smov 128   ;;  %s920_s13 = smov 8  }
   0xd   :  { %21 = dma.hbm_to_vmem [thread:$0]  %s1226_s0, 1280, %s16_s10, [#allocation3], %s919_s12, %s919_s12, %s920_s13  }
   0xe   :  { %s921_s16 = smov [#allocation5]  }
   0xf   :  { %s27_s17 = sshll.u32 %s921_s16, 4  ;;  %s28_s17 = int_to_ptr.vmem [resolvable:$true] %s27_s17 }
  0x10   :  { %s880_s18 = scalar_lea.vmem %s28_s17, 640  ;;  %p885_p6 = scmp.lt.s32.totalorder %s28_s17, %s28_s17 }
  0x11   :  { %p881_p5 = scmp.ne.s32.totalorder %s28_s17, %s880_s18  ;;  %p886_p7 = scmp.lt.s32.totalorder %s880_s18, %s880_s18 }
  0x13   :  { %p887_p8 = por %p886_p7, %p885_p6 }
  0x15   :  { %p888_p9 = pnand %p887_p8, %p881_p5 }
  0x17   :  { %891 = shalt.err (!%p888_p9)
}
  0x18   :  { %33 = dma.hbm_to_vmem [thread:$0]  %s1227_s1, 640, %s28_s17, [#allocation6], %s919_s12, %s919_s12, %s920_s13  }
  0x19   :  { %912 = dma.done.wait [#allocation3], 1280  }
  0x1a   :  { %913 = vsyncadd [#allocation3], 4294966016 }
  0x1b   :  { %914 = dma.done.wait [#allocation6], 640  }
  0x1c   :  { %915 = vsyncadd [#allocation6], 4294966656  ;;  %v64_v0 = vlaneseq  ;;  %v922_v1 = vmov 1983009808   ;;  %v953_v10 = vld [vmem:[#allocation5 + $0x8] sm:$0xff]  ;;  %vm165_vm0 = vcmask 517120  }
  0x1d   :  { %v62_v2 = vunpack.c.l.s4 %v922_v1  ;;  %v957_v12 = vld [vmem:[#allocation5] sm:$0xff]  ;;  %v959_v13 = vld [vmem:[#allocation5 + $0x10] sm:$0xff]  ;;  %v965_v16 = vld [vmem:[#allocation5 + $0x18] sm:$0xff]  ;;  %vm410_vm1 = vcmask 519168   ;;  %vm406_vm2 = vcmask 523264   ;;  %vm619_vm3 = vcmask 130112  }
  0x1e   :  { %v65_v3 = vshrl.u32 %v64_v0, 7  ;;  %v609_v4 = vand.u32 127, %v64_v0  ;;  %v972_v19 = vld [vmem:[#allocation5 + $0x20] sm:$0xff]  ;;  %v987_v1 = vld [vmem:[#allocation2 + $0x18] sm:$0xf]  ;;  %vm792_vm4 = vcmask 1041409  }
  0x1f   :  { %v63_v5 = vunpack.c.0.s8 %v62_v2  ;;  %v77_v2 = vcombine.high %v953_v10, %v953_v10  ;;  %vm794_vm5 = vcmask 1042434   ;;  %vm796_vm6 = vcmask 1043459   ;;  %s923_s0 = smov [#allocation7]  }
  0x20   :  { %v947_v6 = vsub.s32 %v609_v4, %v65_v3  ;;  %v614_v7 = vadd.s32 4294967288, %v609_v4  ;;  %vm815_vm7 = vcmask 93184   ;;  %s826_s1 = sshll.u32 %s923_s0, 4  ;;  %s827_s1 = int_to_ptr.vmem [resolvable:$true] %s826_s1 }
  0x21   :  { %v949_v8 = vsub.s32 %v63_v5, %v65_v3  ;;  %s892_s21 = scalar_lea.vmem %s827_s1, 320  ;;  %p897_p11 = scmp.lt.s32.totalorder %s827_s1, %s827_s1 }
  0x22   :  { %v951_v9 = vsub.s32 %v614_v7, %v65_v3  ;;  %v991_v3 = vld [vmem:[#allocation2] sm:$0xff]  ;;  %v993_v7 = vld [vmem:[#allocation2 + $0x10] sm:$0xff]  ;;  %p893_p10 = scmp.ne.s32.totalorder %s827_s1, %s892_s21  ;;  %p898_p12 = scmp.lt.s32.totalorder %s892_s21, %s892_s21 }
  0x23   :  { %v84_v11 = vrot.slane %v953_v10, %v949_v8  ;;  %v67_v14 = vrot.slane %v957_v12, %v949_v8  ;;  %v101_v15 = vrot.slane %v959_v13, %v949_v8  ;;  %v970_v18 = vrot.slane %v965_v16, %v949_v8 }
  0x24   :  { %v978_v24 = vrot.slane %v972_v19, %v949_v8  ;;  %p899_p13 = por %p898_p12, %p897_p11 }
  0x25   :  { %v194_v17 = vsel %vm165_vm0, %v84_v11, 0.0  ;;  %v92_v20 = vcombine.high %v84_v11, %v84_v11  ;;  %v166_v22 = vsel %vm165_vm0, %v67_v14, 0.0  ;;  %v222_v23 = vsel %vm165_vm0, %v101_v15, 0.0 }
  0x26   :  { %v195_v21 = vrot.slane %v194_v17, 4  ;;  %v167_v25 = vrot.slane %v166_v22, 4  ;;  %v223_v26 = vrot.slane %v222_v23, 4  ;;  %v250_v27 = vsel %vm165_vm0, %v970_v18, 0.0  ;;  %p900_p0 = pnand %p899_p13, %p893_p10 }
  0x27   :  { %v75_v28 = vcombine.high %v67_v14, %v67_v14  ;;  %v251_v30 = vrot.slane %v250_v27, 4  ;;  %v278_v31 = vsel %vm165_vm0, %v978_v24, 0.0  ;;  %v201_v32 = vsel %vm165_vm0, %v92_v20, 0.0 }
  0x28   :  { %v196_v29 = vadd.f32 %v195_v21, %v194_v17  ;;  %v168_v33 = vadd.f32 %v167_v25, %v166_v22  ;;  %v224_v34 = vadd.f32 %v223_v26, %v222_v23  ;;  %v279_v35 = vrot.slane %v278_v31, 4  ;;  %v997_v17 = vld [vmem:[#allocation2 + $0x8] sm:$0xf]  ;;  %v999_v26 = vld [vmem:[#allocation2 + $0x38] sm:$0xf] }
  0x29   :  { %v173_v36 = vsel %vm165_vm0, %v75_v28, 0.0  ;;  %v252_v38 = vadd.f32 %v251_v30, %v250_v27  ;;  %v202_v40 = vrot.slane %v201_v32, 4  ;;  %v109_v44 = vcombine.high %v101_v15, %v101_v15  ;;  %v995_v15 = vld [vmem:[#allocation2 + $0x28] sm:$0xf]  ;;  %v1001_v27 = vld [vmem:[#allocation2 + $0x20] sm:$0xff] }
  0x2a   :  { %v197_v37 = vrot.slane %v196_v29, 2  ;;  %v174_v39 = vrot.slane %v173_v36, 4  ;;  %v169_v41 = vrot.slane %v168_v33, 2  ;;  %v225_v42 = vrot.slane %v224_v34, 2 }
  0x2b   :  { %v280_v43 = vadd.f32 %v279_v35, %v278_v31  ;;  %v253_v46 = vrot.slane %v252_v38, 2  ;;  %v203_v48 = vadd.f32 %v202_v40, %v201_v32  ;;  %v229_v52 = vsel %vm165_vm0, %v109_v44, 0.0 }
  0x2c   :  { %v198_v45 = vadd.f32 %v197_v37, %v196_v29  ;;  %v175_v47 = vadd.f32 %v174_v39, %v173_v36  ;;  %v170_v49 = vadd.f32 %v169_v41, %v168_v33  ;;  %v226_v50 = vadd.f32 %v225_v42, %v224_v34  ;;  %v1008_v36 = vld [vmem:[#allocation2 + $0x48] sm:$0xf] }
  0x2d   :  { %v281_v51 = vrot.slane %v280_v43, 2  ;;  %v254_v54 = vadd.f32 %v253_v46, %v252_v38  ;;  %v204_v56 = vrot.slane %v203_v48, 2  ;;  %v230_v60 = vrot.slane %v229_v52, 4 }
  0x2e   :  { %v199_v53 = vrot.slane %v198_v45, 1  ;;  %v176_v55 = vrot.slane %v175_v47, 2  ;;  %v171_v57 = vrot.slane %v170_v49, 1  ;;  %v227_v58 = vrot.slane %v226_v50, 1 }
  0x2f   :  { %v282_v59 = vadd.f32 %v281_v51, %v280_v43  ;;  %v255_v62 = vrot.slane %v254_v54, 1  ;;  %v205_v0 = vadd.f32 %v204_v56, %v203_v48  ;;  %v231_v22 = vadd.f32 %v230_v60, %v229_v52 }
  0x30   :  { %v200_v61 = vadd.f32 %v199_v53, %v198_v45  ;;  %v177_v63 = vadd.f32 %v176_v55, %v175_v47  ;;  %v172_v4 = vadd.f32 %v171_v57, %v170_v49  ;;  %v228_v5 = vadd.f32 %v227_v58, %v226_v50  ;;  %v1012_v45 = vld [vmem:[#allocation2 + $0x30] sm:$0xff]  ;;  %v1018_v50 = vld [vmem:[#allocation2 + $0x40] sm:$0xff] }
  0x31   :  { %v283_v11 = vrot.slane %v282_v59, 1  ;;  %v256_v20 = vadd.f32 %v255_v62, %v254_v54  ;;  %v206_v28 = vrot.slane %v205_v0, 1  ;;  %v232_v46 = vrot.slane %v231_v22, 2 }
  0x32   :  { %v310_v14 = vmul.f32 0.5, %v200_v61  ;;  %v178_v21 = vrot.slane %v177_v63, 1  ;;  %v306_v23 = vmul.f32 0.5, %v172_v4  ;;  %v314_v25 = vmul.f32 0.5, %v228_v5 }
  0x33   :  { %v284_v10 = vadd.f32 %v283_v11, %v282_v59  ;;  %v318_v30 = vmul.f32 0.5, %v256_v20  ;;  %v60_v48 = vcombine.high %v957_v12, %v957_v12  ;;  %v94_v51 = vcombine.high %v959_v13, %v959_v13 }
  0x34   :  { %v335_v29 = vsub.f32 %v310_v14, %v987_v1  ;;  %v334_v31 = vsub.f32 %v310_v14, %v993_v7  ;;  %v179_v32 = vadd.f32 %v178_v21, %v177_v63  ;;  %v326_v33 = vsub.f32 %v306_v23, %v991_v3 }
  0x35   :  { %v343_v34 = vsub.f32 %v314_v25, %v995_v15  ;;  %v327_v35 = vsub.f32 %v306_v23, %v997_v17  ;;  %v322_v37 = vmul.f32 0.5, %v284_v10  ;;  %v351_v39 = vsub.f32 %v318_v30, %v999_v26 }
  0x36   :  { %v375_v38 = vmul.f32 %v335_v29, %v335_v29  ;;  %v374_v40 = vmul.f32 %v334_v31, %v334_v31  ;;  %v342_v41 = vsub.f32 %v314_v25, %v1001_v27  ;;  %v366_v42 = vmul.f32 %v326_v33, %v326_v33 }
  0x37   :  { %v383_v43 = vmul.f32 %v343_v34, %v343_v34  ;;  %v367_v44 = vmul.f32 %v327_v35, %v327_v35  ;;  %v359_v49 = vsub.f32 %v322_v37, %v1008_v36  ;;  %v391_v53 = vmul.f32 %v351_v39, %v351_v39 }
  0x38   :  { %v435_v47 = vsel %vm410_vm1, %v375_v38, 0.0  ;;  %v407_v52 = vsel %vm406_vm2, %v366_v42, 0.0  ;;  %v432_v54 = vsel %vm406_vm2, %v374_v40, 0.0  ;;  %v1025_v55 = vrot.slane %v77_v2, %v949_v8 }
  0x39   :  { %436 = vadd.xlane.f32.xlu1 %v435_v47  ;;  %408 = vadd.xlane.f32.xlu0 %v407_v52  ;;  %v459_v56 = vsel %vm410_vm1, %v383_v43, 0.0  ;;  %v382_v12 = vmul.f32 %v342_v41, %v342_v41  ;;  %v307_v57 = vmul.f32 0.5, %v179_v32  ;;  %v350_v58 = vsub.f32 %v318_v30, %v1012_v45 }
  0x3a   :  { %v411_v59 = vsel %vm410_vm1, %v367_v44, 0.0  ;;  %v358_v13 = vsub.f32 %v322_v37, %v1018_v50  ;;  %v207_v60 = vadd.f32 %v206_v28, %v205_v0  ;;  %v233_v61 = vadd.f32 %v232_v46, %v231_v22 }
  0x3b   :  { %v399_v62 = vmul.f32 %v359_v49, %v359_v49  ;;  %v328_v63 = vsub.f32 %v307_v57, %v991_v3  ;;  %v329_v4 = vsub.f32 %v307_v57, %v997_v17  ;;  %v126_v2 = vcombine.high %v970_v18, %v970_v18 }
  0x3c   :  { %v390_v5 = vmul.f32 %v350_v58, %v350_v58  ;;  %v311_v11 = vmul.f32 0.5, %v207_v60  ;;  %v234_v14 = vrot.slane %v233_v61, 1  ;;  %v143_v20 = vcombine.high %v978_v24, %v978_v24 }
  0x3d   :  { %460 = vadd.xlane.f32.xlu1 %v459_v56  ;;  %412 = vadd.xlane.f32.xlu0 %v411_v59  ;;  %v483_v21 = vsel %vm410_vm1, %v391_v53, 0.0  ;;  %v368_v0 = vmul.f32 %v328_v63, %v328_v63  ;;  %v398_v22 = vmul.f32 %v358_v13, %v358_v13  ;;  %v257_v23 = vsel %vm165_vm0, %v126_v2, 0.0 }
  0x3e   :  { %v369_v25 = vmul.f32 %v329_v4, %v329_v4  ;;  %v337_v10 = vsub.f32 %v311_v11, %v987_v1  ;;  %v336_v28 = vsub.f32 %v311_v11, %v993_v7  ;;  %v235_v18 = vadd.f32 %v234_v14, %v233_v61 }
  0x3f   :  { %v507_v29 = vsel %vm410_vm1, %v399_v62, 0.0  ;;  %v456_v30 = vsel %vm406_vm2, %v382_v12, 0.0  ;;  %v258_v31 = vrot.slane %v257_v23, 4  ;;  %v285_v24 = vsel %vm165_vm0, %v143_v20, 0.0 }
  0x40   :  { %v480_v32 = vsel %vm406_vm2, %v390_v5, 0.0  ;;  %v377_v33 = vmul.f32 %v337_v10, %v337_v10  ;;  %v315_v34 = vmul.f32 0.5, %v235_v18  ;;  %v286_v35 = vrot.slane %v285_v24, 4 }
  0x41   :  { %484 = vadd.xlane.f32.xlu1 %v483_v21  ;;  %433 = vadd.xlane.f32.xlu0 %v432_v54  ;;  %v259_v37 = vadd.f32 %v258_v31, %v257_v23  ;;  %v1046_v38 = vrot.slane %v60_v48, %v949_v8  ;;  %v208_v39 = vsel %vm165_vm0, %v1025_v55, 0.0  ;;  %v1051_v40 = vrot.slane %v94_v51, %v949_v8 }
  0x42   :  { %v414_v41 = vsel %vm406_vm2, %v368_v0, 0.0  ;;  %v417_v42 = vsel %vm410_vm1, %v369_v25, 0.0  ;;  %v504_v43 = vsel %vm406_vm2, %v398_v22, 0.0  ;;  %v376_v44 = vmul.f32 %v336_v28, %v336_v28 }
  0x43   :  { %v260_v46 = vrot.slane %v259_v37, 2  ;;  %v287_v47 = vadd.f32 %v286_v35, %v285_v24  ;;  %v180_v49 = vsel %vm165_vm0, %v1046_v38, 0.0  ;;  %v209_v48 = vrot.slane %v208_v39, 4 }
  0x44   :  { %v441_v52 = vsel %vm410_vm1, %v377_v33, 0.0  ;;  %v345_v53 = vsub.f32 %v315_v34, %v995_v15  ;;  %v181_v51 = vrot.slane %v180_v49, 4  ;;  %v236_v54 = vsel %vm165_vm0, %v1051_v40, 0.0 }
  0x45   :  { %508 = vadd.xlane.f32.xlu1 %v507_v29  ;;  %457 = vadd.xlane.f32.xlu0 %v456_v30  ;;  %v261_v56 = vadd.f32 %v260_v46, %v259_v37  ;;  %v288_v12 = vrot.slane %v287_v47, 2  ;;  %v210_v57 = vadd.f32 %v209_v48, %v208_v39  ;;  %v237_v58 = vrot.slane %v236_v54, 4 }
  0x46   :  { %v438_v59 = vsel %vm406_vm2, %v376_v44, 0.0  ;;  %v344_v13 = vsub.f32 %v315_v34, %v1001_v27  ;;  %v182_v60 = vadd.f32 %v181_v51, %v180_v49  ;;  %v111_v61 = vcombine.high %v965_v16, %v965_v16 }
  0x47   :  { %v262_v62 = vrot.slane %v261_v56, 1  ;;  %v289_v63 = vadd.f32 %v288_v12, %v287_v47  ;;  %v211_v4 = vrot.slane %v210_v57, 2  ;;  %v238_v2 = vadd.f32 %v237_v58, %v236_v54 }
  0x48   :  { %v385_v5 = vmul.f32 %v345_v53, %v345_v53  ;;  %v183_v11 = vrot.slane %v182_v60, 2  ;;  %v1067_v14 = vrot.slane %v111_v61, %v949_v8  ;;  %v128_v20 = vcombine.high %v972_v19, %v972_v19 }
  0x49   :  { %415 = vadd.xlane.f32.xlu1 %v414_v41  ;;  %481 = vadd.xlane.f32.xlu0 %v480_v32  ;;  %v263_v21 = vadd.f32 %v262_v62, %v261_v56  ;;  %v290_v0 = vrot.slane %v289_v63, 1  ;;  %v212_v22 = vadd.f32 %v211_v4, %v210_v57  ;;  %v239_v23 = vrot.slane %v238_v2, 2 }
  0x4a   :  { %v384_v25 = vmul.f32 %v344_v13, %v344_v13  ;;  %v184_v16 = vadd.f32 %v183_v11, %v182_v60  ;;  %v264_v10 = vsel %vm165_vm0, %v1067_v14, 0.0  ;;  %v1074_v28 = vrot.slane %v128_v20, %v949_v8 }
  0x4b   :  { %v319_v18 = vmul.f32 0.5, %v263_v21  ;;  %v291_v29 = vadd.f32 %v290_v0, %v289_v63  ;;  %v213_v30 = vrot.slane %v212_v22, 1  ;;  %v240_v31 = vadd.f32 %v239_v23, %v238_v2 }
  0x4c   :  { %v465_v19 = vsel %vm410_vm1, %v385_v5, 0.0  ;;  %v185_v24 = vrot.slane %v184_v16, 1  ;;  %v265_v32 = vrot.slane %v264_v10, 4  ;;  %v76_v33 = vcombine.high %v1046_v38, %v1046_v38 }
  0x4d   :  { %418 = vadd.xlane.f32.xlu1 %v417_v42  ;;  %505 = vadd.xlane.f32.xlu0 %v504_v43  ;;  %v353_v34 = vsub.f32 %v319_v18, %v999_v26  ;;  %v352_v35 = vsub.f32 %v319_v18, %v1012_v45  ;;  %v323_v37 = vmul.f32 0.5, %v291_v29  ;;  %v214_v8 = vadd.f32 %v213_v30, %v212_v22 }
  0x4e   :  { %v186_v39 = vadd.f32 %v185_v24, %v184_v16  ;;  %v241_v41 = vrot.slane %v240_v31, 1  ;;  %v266_v44 = vadd.f32 %v265_v32, %v264_v10  ;;  %v292_v42 = vsel %vm165_vm0, %v1074_v28, 0.0 }
  0x4f   :  { %v462_v46 = vsel %vm406_vm2, %v384_v25, 0.0  ;;  %v393_v47 = vmul.f32 %v353_v34, %v353_v34  ;;  %v361_v49 = vsub.f32 %v323_v37, %v1008_v36  ;;  %v360_v38 = vsub.f32 %v323_v37, %v1018_v50 }
  0x50   :  { %v308_v43 = vmul.f32 0.5, %v186_v39  ;;  %v312_v48 = vmul.f32 0.5, %v214_v8  ;;  %v242_v53 = vadd.f32 %v241_v41, %v240_v31  ;;  %v267_v51 = vrot.slane %v266_v44, 2 }
  0x51   :  { %442 = vadd.xlane.f32.xlu1 %v441_v52  ;;  %439 = vadd.xlane.f32.xlu0 %v438_v59  ;;  %v392_v54 = vmul.f32 %v352_v35, %v352_v35  ;;  %v401_v56 = vmul.f32 %v361_v49, %v361_v49  ;;  %v293_v12 = vrot.slane %v292_v42, 4  ;;  %v187_v57 = vsel %vm165_vm0, %v76_v33, 0.0 }
  0x52   :  { %v400_v58 = vmul.f32 %v360_v38, %v360_v38  ;;  %v331_v13 = vsub.f32 %v308_v43, %v997_v17  ;;  %v330_v60 = vsub.f32 %v308_v43, %v991_v3  ;;  %v339_v61 = vsub.f32 %v312_v48, %v987_v1 }
  0x53   :  { %v338_v62 = vsub.f32 %v312_v48, %v993_v7  ;;  %v316_v52 = vmul.f32 0.5, %v242_v53  ;;  %v268_v63 = vadd.f32 %v267_v51, %v266_v44  ;;  %v489_v4 = vsel %vm410_vm1, %v393_v47, 0.0 }
  0x54   :  { %v188_v59 = vrot.slane %v187_v57, 4  ;;  %v486_v2 = vsel %vm406_vm2, %v392_v54, 0.0  ;;  %v371_v5 = vmul.f32 %v331_v13, %v331_v13  ;;  %v294_v20 = vadd.f32 %v293_v12, %v292_v42 }
  0x55   :  { %466 = vadd.xlane.f32.xlu1 %v465_v19  ;;  %463 = vadd.xlane.f32.xlu0 %v462_v46  ;;  %v269_v11 = vrot.slane %v268_v63, 1  ;;  %v513_v21 = vsel %vm410_vm1, %v401_v56, 0.0  ;;  %v510_v0 = vsel %vm406_vm2, %v400_v58, 0.0  ;;  %v370_v22 = vmul.f32 %v330_v60, %v330_v60 }
  0x56   :  { %v379_v23 = vmul.f32 %v339_v61, %v339_v61  ;;  %v378_v25 = vmul.f32 %v338_v62, %v338_v62  ;;  %v347_v16 = vsub.f32 %v316_v52, %v995_v15  ;;  %v295_v18 = vrot.slane %v294_v20, 2 }
  0x57   :  { %v270_v10 = vadd.f32 %v269_v11, %v268_v63  ;;  %v189_v29 = vadd.f32 %v188_v59, %v187_v57  ;;  %v93_v30 = vcombine.high %v1025_v55, %v1025_v55  ;;  %v110_v31 = vcombine.high %v1051_v40, %v1051_v40 }
  0x58   :  { %v127_v19 = vcombine.high %v1067_v14, %v1067_v14  ;;  %v423_v24 = vsel %vm410_vm1, %v371_v5, 0.0  ;;  %v346_v32 = vsub.f32 %v316_v52, %v1001_v27  ;;  %v296_v34 = vadd.f32 %v295_v18, %v294_v20 }
  0x59   :  { %490 = vadd.xlane.f32.xlu1 %v489_v4  ;;  %487 = vadd.xlane.f32.xlu0 %v486_v2  ;;  %v320_v33 = vmul.f32 0.5, %v270_v10  ;;  %v190_v35 = vrot.slane %v189_v29, 2  ;;  %v215_v37 = vsel %vm165_vm0, %v93_v30, 0.0  ;;  %v243_v8 = vsel %vm165_vm0, %v110_v31, 0.0 }
  0x5a   :  { %v271_v55 = vsel %vm165_vm0, %v127_v19, 0.0  ;;  %v420_v39 = vsel %vm406_vm2, %v370_v22, 0.0  ;;  %v447_v40 = vsel %vm410_vm1, %v379_v23, 0.0  ;;  %v297_v41 = vrot.slane %v296_v34, 1 }
  0x5b   :  { %v216_v14 = vrot.slane %v215_v37, 4  ;;  %v191_v44 = vadd.f32 %v190_v35, %v189_v29  ;;  %v244_v42 = vrot.slane %v243_v8, 4  ;;  %v272_v46 = vrot.slane %v271_v55, 4 }
  0x5c   :  { %v144_v47 = vcombine.high %v1074_v28, %v1074_v28  ;;  %v444_v49 = vsel %vm406_vm2, %v378_v25, 0.0  ;;  %v355_v38 = vsub.f32 %v320_v33, %v999_v26  ;;  %v298_v43 = vadd.f32 %v297_v41, %v296_v34 }
  0x5d   :  { %514 = vadd.xlane.f32.xlu1 %v513_v21  ;;  %511 = vadd.xlane.f32.xlu0 %v510_v0  ;;  %v217_v48 = vadd.f32 %v216_v14, %v215_v37  ;;  %v192_v53 = vrot.slane %v191_v44, 1  ;;  %v245_v51 = vadd.f32 %v244_v42, %v243_v8  ;;  %v273_v54 = vadd.f32 %v272_v46, %v271_v55 }
  0x5e   :  { %v299_v56 = vsel %vm165_vm0, %v144_v47, 0.0  ;;  %v387_v12 = vmul.f32 %v347_v16, %v347_v16  ;;  %v354_v57 = vsub.f32 %v320_v33, %v1012_v45  ;;  %v324_v58 = vmul.f32 0.5, %v298_v43 }
  0x5f   :  { %v218_v13 = vrot.slane %v217_v48, 2  ;;  %v193_v60 = vadd.f32 %v192_v53, %v191_v44  ;;  %v246_v28 = vrot.slane %v245_v51, 2  ;;  %v274_v61 = vrot.slane %v273_v54, 2 }
  0x60   :  { %v300_v62 = vrot.slane %v299_v56, 4  ;;  %v386_v52 = vmul.f32 %v346_v32, %v346_v32  ;;  %v363_v63 = vsub.f32 %v324_v58, %v1008_v36  ;;  %v362_v4 = vsub.f32 %v324_v58, %v1018_v50 }
  0x61   :  { %424 = vadd.xlane.f32.xlu1 %v423_v24  ;;  %421 = vadd.xlane.f32.xlu0 %v420_v39  ;;  %v219_v59 = vadd.f32 %v218_v13, %v217_v48  ;;  %v395_v2 = vmul.f32 %v355_v38, %v355_v38  ;;  %v247_v5 = vadd.f32 %v246_v28, %v245_v51  ;;  %v309_v0 = vmul.f32 0.5, %v193_v60 }
  0x62   :  { %v275_v11 = vadd.f32 %v274_v61, %v273_v54  ;;  %v301_v20 = vadd.f32 %v300_v62, %v299_v56  ;;  %v394_v21 = vmul.f32 %v354_v57, %v354_v57  ;;  %v403_v23 = vmul.f32 %v363_v63, %v363_v63 }
  0x63   :  { %v220_v22 = vrot.slane %v219_v59, 1  ;;  %v248_v25 = vrot.slane %v247_v5, 1  ;;  %v471_v10 = vsel %vm410_vm1, %v387_v12, 0.0  ;;  %v402_v18 = vmul.f32 %v362_v4, %v362_v4 }
  0x64   :  { %v276_v16 = vrot.slane %v275_v11, 1  ;;  %v302_v30 = vrot.slane %v301_v20, 2  ;;  %v468_v31 = vsel %vm406_vm2, %v386_v52, 0.0  ;;  %v495_v19 = vsel %vm410_vm1, %v395_v2, 0.0 }
  0x65   :  { %448 = vadd.xlane.f32.xlu1 %v447_v40  ;;  %445 = vadd.xlane.f32.xlu0 %v444_v49  ;;  %v221_v29 = vadd.f32 %v220_v22, %v219_v59  ;;  %v249_v24 = vadd.f32 %v248_v25, %v247_v5  ;;  %v492_v33 = vsel %vm406_vm2, %v394_v21, 0.0  ;;  %v333_v34 = vsub.f32 %v309_v0, %v997_v17 }
  0x66   :  { %v277_v32 = vadd.f32 %v276_v16, %v275_v11  ;;  %v303_v37 = vadd.f32 %v302_v30, %v301_v20  ;;  %v519_v8 = vsel %vm410_vm1, %v403_v23, 0.0  ;;  %v332_v55 = vsub.f32 %v309_v0, %v991_v3 }
  0x67   :  { %v313_v35 = vmul.f32 0.5, %v221_v29  ;;  %v317_v39 = vmul.f32 0.5, %v249_v24  ;;  %v516_v41 = vsel %vm406_vm2, %v402_v18, 0.0  ;;  %v373_v38 = vmul.f32 %v333_v34, %v333_v34 }
  0x68   :  { %v321_v40 = vmul.f32 0.5, %v277_v32  ;;  %v304_v42 = vrot.slane %v303_v37, 1 }
  0x69   :  { %472 = vadd.xlane.f32.xlu1 %v471_v10  ;;  %469 = vadd.xlane.f32.xlu0 %v468_v31  ;;  %v341_v14 = vsub.f32 %v313_v35, %v987_v1  ;;  %v340_v44 = vsub.f32 %v313_v35, %v993_v7  ;;  %v349_v46 = vsub.f32 %v317_v39, %v995_v15  ;;  %v429_v60 = vsel %vm410_vm1, %v373_v38, 0.0 }
  0x6a   :  { %v348_v17 = vsub.f32 %v317_v39, %v1001_v27  ;;  %v357_v47 = vsub.f32 %v321_v40, %v999_v26  ;;  %v356_v49 = vsub.f32 %v321_v40, %v1012_v45  ;;  %v305_v48 = vadd.f32 %v304_v42, %v303_v37 }
  0x6b   :  { %v381_v3 = vmul.f32 %v341_v14, %v341_v14  ;;  %v380_v43 = vmul.f32 %v340_v44, %v340_v44  ;;  %v389_v53 = vmul.f32 %v349_v46, %v349_v46  ;;  %v372_v7 = vmul.f32 %v332_v55, %v332_v55 }
  0x6c   :  { %v388_v51 = vmul.f32 %v348_v17, %v348_v17  ;;  %v397_v54 = vmul.f32 %v357_v47, %v357_v47  ;;  %v396_v1 = vmul.f32 %v356_v49, %v356_v49  ;;  %v325_v27 = vmul.f32 0.5, %v305_v48 }
  0x6d   :  { %496 = vadd.xlane.f32.xlu1 %v495_v19  ;;  %493 = vadd.xlane.f32.xlu0 %v492_v33  ;;  %v453_v56 = vsel %vm410_vm1, %v381_v3, 0.0  ;;  %v450_v15 = vsel %vm406_vm2, %v380_v43, 0.0  ;;  %v477_v26 = vsel %vm410_vm1, %v389_v53, 0.0  ;;  %v426_v62 = vsel %vm406_vm2, %v372_v7, 0.0 }
  0x6e   :  { %v474_v45 = vsel %vm406_vm2, %v388_v51, 0.0  ;;  %v501_v12 = vsel %vm410_vm1, %v397_v54, 0.0  ;;  %v498_v57 = vsel %vm406_vm2, %v396_v1, 0.0  ;;  %v365_v58 = vsub.f32 %v325_v27, %v1008_v36 }
  0x6f   :  { %v364_v13 = vsub.f32 %v325_v27, %v1018_v50 }
  0x70   :  { %v405_v28 = vmul.f32 %v365_v58, %v365_v58 }
  0x71   :  { %520 = vadd.xlane.f32.xlu1 %v519_v8  ;;  %517 = vadd.xlane.f32.xlu0 %v516_v41  ;;  %v404_v61 = vmul.f32 %v364_v13, %v364_v13 }
  0x72   :  { %v525_v52 = vsel %vm410_vm1, %v405_v28, 0.0 }
  0x73   :  { %v522_v63 = vsel %vm406_vm2, %v404_v61, 0.0 }
  0x75   :  { %430 = vadd.xlane.f32.xlu1 %v429_v60  ;;  %427 = vadd.xlane.f32.xlu0 %v426_v62 }
  0x79   :  { %454 = vadd.xlane.f32.xlu1 %v453_v56  ;;  %451 = vadd.xlane.f32.xlu0 %v450_v15 }
  0x7d   :  { %478 = vadd.xlane.f32.xlu1 %v477_v26  ;;  %475 = vadd.xlane.f32.xlu0 %v474_v45 }
  0x81   :  { %502 = vadd.xlane.f32.xlu1 %v501_v12  ;;  %499 = vadd.xlane.f32.xlu0 %v498_v57 }
  0x85   :  { %526 = vadd.xlane.f32.xlu1 %v525_v52  ;;  %523 = vadd.xlane.f32.xlu0 %v522_v63 }
  0xc2   :  { %v437_v36 = vpop.xlane.xlu1 %436  ;;  %v409_v50 = vpop.xlane.xlu0 %408 }
  0xc3   :  { %v528_v4 = vsub.f32 0.0, %v409_v50  ;;  %v537_v11 = vsub.f32 0.0, %v437_v36 }
  0xc5   :  { %v613_v20 = vrot.slane %v528_v4, %v947_v6  ;;  %v655_v16 = vrot.slane %v537_v11, %v951_v9 }
  0xc6   :  { %v461_v59 = vpop.xlane.xlu1 %460  ;;  %v413_v2 = vpop.xlane.xlu0 %412 }
  0xc7   :  { %v529_v5 = vsub.f32 0.0, %v413_v2  ;;  %v545_v10 = vsub.f32 0.0, %v461_v59 }
  0xc9   :  { %v618_v21 = vrot.slane %v529_v5, %v951_v9  ;;  %v691_v24 = vrot.slane %v545_v10, %v951_v9 }
  0xca   :  { %v485_v0 = vpop.xlane.xlu1 %484  ;;  %v434_v22 = vpop.xlane.xlu0 %433 }
  0xcb   :  { %v620_v23 = vsel %vm619_vm3, %v618_v21, %v613_v20  ;;  %v536_v25 = vsub.f32 0.0, %v434_v22  ;;  %v553_v32 = vsub.f32 0.0, %v485_v0 }
  0xcd   :  { %v651_v18 = vrot.slane %v536_v25, %v947_v6  ;;  %v727_v39 = vrot.slane %v553_v32, %v951_v9 }
  0xce   :  { %v509_v29 = vpop.xlane.xlu1 %508  ;;  %v458_v30 = vpop.xlane.xlu0 %457 }
  0xcf   :  { %v656_v31 = vsel %vm619_vm3, %v655_v16, %v651_v18  ;;  %v544_v19 = vsub.f32 0.0, %v458_v30  ;;  %v561_v40 = vsub.f32 0.0, %v509_v29 }
  0xd1   :  { %v687_v33 = vrot.slane %v544_v19, %v947_v6  ;;  %v763_v38 = vrot.slane %v561_v40, %v951_v9 }
  0xd2   :  { %v416_v34 = vpop.xlane.xlu1 %415  ;;  %v482_v35 = vpop.xlane.xlu0 %481 }
  0xd3   :  { %v692_v37 = vsel %vm619_vm3, %v691_v24, %v687_v33  ;;  %v552_v8 = vsub.f32 0.0, %v482_v35  ;;  %v530_v55 = vsub.f32 0.0, %v416_v34 }
  0xd5   :  { %v723_v41 = vrot.slane %v552_v8, %v947_v6  ;;  %v624_v47 = vrot.slane %v530_v55, %v947_v6 }
  0xd6   :  { %v419_v14 = vpop.xlane.xlu1 %418  ;;  %v506_v42 = vpop.xlane.xlu0 %505 }
  0xd7   :  { %v531_v44 = vsub.f32 0.0, %v419_v14  ;;  %v728_v46 = vsel %vm619_vm3, %v727_v39, %v723_v41  ;;  %v560_v17 = vsub.f32 0.0, %v506_v42 }
  0xd9   :  { %v628_v49 = vrot.slane %v531_v44, %v951_v9  ;;  %v759_v3 = vrot.slane %v560_v17, %v947_v6 }
  0xda   :  { %v443_v43 = vpop.xlane.xlu1 %442  ;;  %v440_v51 = vpop.xlane.xlu0 %439 }
  0xdb   :  { %v629_v48 = vsel %vm619_vm3, %v628_v49, %v624_v47  ;;  %v539_v53 = vsub.f32 0.0, %v443_v43  ;;  %v764_v1 = vsel %vm619_vm3, %v763_v38, %v759_v3  ;;  %v538_v7 = vsub.f32 0.0, %v440_v51 }
  0xdc   :  { %v793_v54 = vsel %vm792_vm4, %v629_v48, %v620_v23 }
  0xdd   :  { %v664_v56 = vrot.slane %v539_v53, %v951_v9  ;;  %v660_v15 = vrot.slane %v538_v7, %v947_v6 }
  0xde   :  { %v467_v27 = vpop.xlane.xlu1 %466  ;;  %v464_v45 = vpop.xlane.xlu0 %463 }
  0xdf   :  { %v547_v26 = vsub.f32 0.0, %v467_v27  ;;  %v665_v12 = vsel %vm619_vm3, %v664_v56, %v660_v15  ;;  %v546_v57 = vsub.f32 0.0, %v464_v45 }
  0xe0   :  { %v798_v58 = vsel %vm792_vm4, %v665_v12, %v656_v31 }
  0xe1   :  { %v700_v13 = vrot.slane %v547_v26, %v951_v9  ;;  %v696_v60 = vrot.slane %v546_v57, %v947_v6 }
  0xe2   :  { %v491_v28 = vpop.xlane.xlu1 %490  ;;  %v488_v62 = vpop.xlane.xlu0 %487 }
  0xe3   :  { %v555_v61 = vsub.f32 0.0, %v491_v28  ;;  %v701_v52 = vsel %vm619_vm3, %v700_v13, %v696_v60  ;;  %v554_v63 = vsub.f32 0.0, %v488_v62 }
  0xe4   :  { %v801_v36 = vsel %vm792_vm4, %v701_v52, %v692_v37 }
  0xe5   :  { %v736_v50 = vrot.slane %v555_v61, %v951_v9  ;;  %v732_v4 = vrot.slane %v554_v63, %v947_v6 }
  0xe6   :  { %v515_v59 = vpop.xlane.xlu1 %514  ;;  %v512_v5 = vpop.xlane.xlu0 %511 }
  0xe7   :  { %v563_v2 = vsub.f32 0.0, %v515_v59  ;;  %v737_v11 = vsel %vm619_vm3, %v736_v50, %v732_v4  ;;  %v562_v20 = vsub.f32 0.0, %v512_v5 }
  0xe8   :  { %v804_v21 = vsel %vm792_vm4, %v737_v11, %v728_v46 }
  0xe9   :  { %v772_v0 = vrot.slane %v563_v2, %v951_v9  ;;  %v768_v22 = vrot.slane %v562_v20, %v947_v6 }
  0xea   :  { %v425_v23 = vpop.xlane.xlu1 %424  ;;  %v422_v16 = vpop.xlane.xlu0 %421 }
  0xeb   :  { %v533_v25 = vsub.f32 0.0, %v425_v23  ;;  %v773_v10 = vsel %vm619_vm3, %v772_v0, %v768_v22  ;;  %v532_v18 = vsub.f32 0.0, %v422_v16 }
  0xec   :  { %v807_v29 = vsel %vm792_vm4, %v773_v10, %v764_v1 }
  0xed   :  { %v637_v30 = vrot.slane %v533_v25, %v951_v9  ;;  %v633_v31 = vrot.slane %v532_v18, %v947_v6 }
  0xee   :  { %v449_v19 = vpop.xlane.xlu1 %448  ;;  %v446_v32 = vpop.xlane.xlu0 %445 }
  0xef   :  { %v541_v24 = vsub.f32 0.0, %v449_v19  ;;  %v638_v33 = vsel %vm619_vm3, %v637_v30, %v633_v31  ;;  %v540_v34 = vsub.f32 0.0, %v446_v32 }
  0xf0   :  { %v795_v35 = vsel %vm794_vm5, %v638_v33, %v793_v54 }
  0xf1   :  { %v673_v37 = vrot.slane %v541_v24, %v951_v9  ;;  %v669_v8 = vrot.slane %v540_v34, %v947_v6 }
  0xf2   :  { %v473_v55 = vpop.xlane.xlu1 %472  ;;  %v470_v40 = vpop.xlane.xlu0 %469 }
  0xf3   :  { %v549_v39 = vsub.f32 0.0, %v473_v55  ;;  %v674_v41 = vsel %vm619_vm3, %v673_v37, %v669_v8  ;;  %v548_v14 = vsub.f32 0.0, %v470_v40 }
  0xf4   :  { %v799_v44 = vsel %vm794_vm5, %v674_v41, %v798_v58 }
  0xf5   :  { %v709_v42 = vrot.slane %v549_v39, %v951_v9  ;;  %v705_v46 = vrot.slane %v548_v14, %v947_v6 }
  0xf6   :  { %v497_v17 = vpop.xlane.xlu1 %496  ;;  %v494_v49 = vpop.xlane.xlu0 %493 }
  0xf7   :  { %v557_v47 = vsub.f32 0.0, %v497_v17  ;;  %v710_v38 = vsel %vm619_vm3, %v709_v42, %v705_v46  ;;  %v556_v3 = vsub.f32 0.0, %v494_v49 }
  0xf8   :  { %v802_v43 = vsel %vm794_vm5, %v710_v38, %v801_v36 }
  0xf9   :  { %v745_v48 = vrot.slane %v557_v47, %v951_v9  ;;  %v741_v53 = vrot.slane %v556_v3, %v947_v6 }
  0xfa   :  { %v521_v51 = vpop.xlane.xlu1 %520  ;;  %v518_v1 = vpop.xlane.xlu0 %517 }
  0xfb   :  { %v565_v54 = vsub.f32 0.0, %v521_v51  ;;  %v746_v7 = vsel %vm619_vm3, %v745_v48, %v741_v53  ;;  %v564_v56 = vsub.f32 0.0, %v518_v1 }
  0xfc   :  { %v805_v15 = vsel %vm794_vm5, %v746_v7, %v804_v21 }
  0xfd   :  { %v781_v27 = vrot.slane %v565_v54, %v951_v9  ;;  %v777_v26 = vrot.slane %v564_v56, %v947_v6 }
  0xfe   :  { %v431_v45 = vpop.xlane.xlu1 %430  ;;  %v428_v57 = vpop.xlane.xlu0 %427 }
  0xff   :  { %v535_v12 = vsub.f32 0.0, %v431_v45  ;;  %v782_v58 = vsel %vm619_vm3, %v781_v27, %v777_v26  ;;  %v534_v13 = vsub.f32 0.0, %v428_v57 }
 0x100   :  { %v808_v60 = vsel %vm794_vm5, %v782_v58, %v807_v29 }
 0x101   :  { %v646_v28 = vrot.slane %v535_v12, %v951_v9  ;;  %v642_v61 = vrot.slane %v534_v13, %v947_v6 }
 0x102   :  { %v455_v62 = vpop.xlane.xlu1 %454  ;;  %v452_v63 = vpop.xlane.xlu0 %451 }
 0x103   :  { %v543_v52 = vsub.f32 0.0, %v455_v62  ;;  %v647_v36 = vsel %vm619_vm3, %v646_v28, %v642_v61  ;;  %v542_v50 = vsub.f32 0.0, %v452_v63 }
 0x104   :  { %v797_v4 = vsel %vm796_vm6, %v647_v36, %v795_v35 }
 0x105   :  { %v682_v59 = vrot.slane %v543_v52, %v951_v9  ;;  %816 = vst.msk [vmem:[#allocation7] sm:$0xf] %vm815_vm7, %v797_v4  ;;  %v678_v2 = vrot.slane %v542_v50, %v947_v6 }
 0x106   :  { %v479_v5 = vpop.xlane.xlu1 %478  ;;  %v476_v20 = vpop.xlane.xlu0 %475 }
 0x107   :  { %v551_v11 = vsub.f32 0.0, %v479_v5  ;;  %v683_v21 = vsel %vm619_vm3, %v682_v59, %v678_v2  ;;  %v550_v0 = vsub.f32 0.0, %v476_v20 }
 0x108   :  { %v800_v22 = vsel %vm796_vm6, %v683_v21, %v799_v44 }
 0x109   :  { %v718_v23 = vrot.slane %v551_v11, %v951_v9  ;;  %817 = vst.msk [vmem:[#allocation7 + $0x4] sm:$0xf] %vm815_vm7, %v800_v22  ;;  %v714_v25 = vrot.slane %v550_v0, %v947_v6 }
 0x10a   :  { %v503_v16 = vpop.xlane.xlu1 %502  ;;  %v500_v18 = vpop.xlane.xlu0 %499 }
 0x10b   :  { %v559_v10 = vsub.f32 0.0, %v503_v16  ;;  %v719_v29 = vsel %vm619_vm3, %v718_v23, %v714_v25  ;;  %v558_v30 = vsub.f32 0.0, %v500_v18 }
 0x10c   :  { %v803_v31 = vsel %vm796_vm6, %v719_v29, %v802_v43 }
 0x10d   :  { %v754_v19 = vrot.slane %v559_v10, %v951_v9  ;;  %818 = vst.msk [vmem:[#allocation7 + $0x8] sm:$0xf] %vm815_vm7, %v803_v31  ;;  %v750_v24 = vrot.slane %v558_v30, %v947_v6 }
 0x10e   :  { %v527_v32 = vpop.xlane.xlu1 %526  ;;  %v524_v34 = vpop.xlane.xlu0 %523 }
 0x10f   :  { %v567_v33 = vsub.f32 0.0, %v527_v32  ;;  %v755_v35 = vsel %vm619_vm3, %v754_v19, %v750_v24  ;;  %v566_v37 = vsub.f32 0.0, %v524_v34 }
 0x110   :  { %v806_v8 = vsel %vm796_vm6, %v755_v35, %v805_v15 }
 0x111   :  { %v790_v55 = vrot.slane %v567_v33, %v951_v9  ;;  %819 = vst.msk [vmem:[#allocation7 + $0xc] sm:$0xf] %vm815_vm7, %v806_v8  ;;  %v786_v39 = vrot.slane %v566_v37, %v947_v6 }
 0x113   :  { %v791_v40 = vsel %vm619_vm3, %v790_v55, %v786_v39 }
 0x114   :  { %v809_v41 = vsel %vm796_vm6, %v791_v40, %v808_v60 }
 0x115   :  { %820 = vst.msk [vmem:[#allocation7 + $0x10] sm:$0xf] %vm815_vm7, %v809_v41 }
 0x116   :  { %903 = shalt.err (!%p900_p0)
}
 0x117   :  { %s924_s22 = smov 64   ;;  %s925_s23 = smov 4  }
 0x118   :  { %832 = dma.vmem_to_hbm [thread:$0]  %s827_s1, 320, %s1228_s2, [#allocation4], %s924_s22, %s924_s22, %s925_s23  }
 0x119   :  { %916 = dma.done.wait [#allocation4], 320  }
 0x11a   :  { %917 = vsyncadd [#allocation4], 4294966976 }
 0x11b   :  { %836 = vsyncpa [#allocation3], 1 }
 0x11c   :  { %837 = vsyncpa [#allocation6], 1 }
 0x11d   :  { %838 = vsyncpa [#allocation4], 1 }

</bundles_post_ra>
